<compile_context>
chip_gen: v6e
topology: v6e:2x2x1
jax: 0.10.0
libtpu: 0.0.40
codegen_flags: <defaults>
</compile_context>

<pallas_src>
import functools

import jax
import jax.numpy as jnp
from jax import lax
from jax.experimental import pallas as pl
from jax.experimental.pallas import tpu as pltpu


def _triplet_kernel(a_ref, p_ref, n_ref, o_ref, *, margin, n_rows, tile_n):
    """One (tile_n, D) tile of anchor/pos/neg -> one partial loss sum.

    The partial sum is written to element [0, 0] of an (8, 128) lane-dense
    output block (rest zeros), so the store is a single unmasked full-block
    vst and the wrapper-side reduction is a trivial sum.
    """
    i = pl.program_id(0)

    # Explicit upcast before the subtraction (bf16-friendly and avoids any
    # pack/unpack shuffles on v5e which has no bf16 VALU).
    a = a_ref[...].astype(jnp.float32)
    p = p_ref[...].astype(jnp.float32)
    n = n_ref[...].astype(jnp.float32)

    dap = a - p
    dan = a - n
    if margin is not None:
        # PyTorch F.pairwise_distance adds eps before taking the norm.
        dap = dap + 1e-6
        dan = dan + 1e-6

    # Per-row L2 norms (XLU cross-lane reduce; f32 accumulation).
    ap = jnp.sqrt(jnp.sum(dap * dap, axis=1, keepdims=True))  # (tile_n, 1)
    an = jnp.sqrt(jnp.sum(dan * dan, axis=1, keepdims=True))  # (tile_n, 1)

    if margin is None:
        # SoftMarginLoss(an - ap, y=+1) = softplus(-(an - ap)); stable form.
        x = an - ap
        per = jnp.maximum(-x, 0.0) + jnp.log1p(jnp.exp(-jnp.abs(x)))
    else:
        per = jnp.maximum(ap - an + float(margin), 0.0)

    # Mask rows of a ragged last tile (reads past n_rows are unspecified
    # padding); REQUIRED because we reduce to a per-tile partial sum.
    row = i * tile_n + lax.broadcasted_iota(jnp.int32, per.shape, 0)
    per = jnp.where(row < n_rows, per, 0.0)

    tile_sum = jnp.sum(per, axis=0, keepdims=True)            # (1, 1)

    # Lane-dense (8,128) output block: partial sum at [0,0], zeros elsewhere.
    r = lax.broadcasted_iota(jnp.int32, (8, 128), 0)
    c = lax.broadcasted_iota(jnp.int32, (8, 128), 1)
    o_ref[...] = jnp.where((r == 0) & (c == 0),
                           jnp.broadcast_to(tile_sum, (8, 128)),
                           jnp.zeros((8, 128), jnp.float32))


def _pick_tile_n(n_rows, d, itemsize):
    """Generation-aware row-tile selection.

    Budgets ~60% of this chip's VMEM for the 3 input streams x 2 pipeline
    buffers (the (8,128) output block is ~4 KiB and ignored).  Guarantees at
    least 2 grid steps when there is enough work so both v7x TensorCores get
    a share and the DMA pipeline has something to overlap.
    """
    try:
        vmem_cap = int(pltpu.get_tpu_info().vmem_capacity_bytes)
    except Exception:  # not on TPU / old runtime: assume the smallest (v7x)
        vmem_cap = 64 * 1024 * 1024

    budget = (vmem_cap * 3) // 5                      # ~60% of VMEM
    tile = budget // (3 * 2 * max(d, 1) * itemsize)   # rows per input block
    tile = max(8, min(int(tile), 16384))
    tile -= tile % 8

    if tile >= n_rows:
        if n_rows >= 64:
            # Split into (at least) two tiles so v7x's 2 TensorCores both
            # work and pipelining survives; harmless on v5e/v6e.
            half = (n_rows + 1) // 2
            tile = ((half + 7) // 8) * 8
            if tile >= n_rows:                        # safety (tiny n_rows)
                tile = max(8, tile - 8)
        else:
            tile = n_rows                             # single full block
    return tile, vmem_cap


def triplet_loss(anchor, pos, neg, margin=None, *, tile_n=None):
    """Pallas equivalent of TripletLoss(margin).forward(anchor, pos, neg).

    anchor/pos/neg: (N, D) arrays. Returns a scalar float32 loss.
    """
    assert anchor.shape == pos.shape == neg.shape and anchor.ndim == 2
    n_rows, d = anchor.shape
    itemsize = jnp.dtype(anchor.dtype).itemsize

    auto_tile, vmem_cap = _pick_tile_n(n_rows, d, itemsize)
    if tile_n is None:
        tile_n = auto_tile
    tile_n = min(int(tile_n), n_rows)
    if tile_n < n_rows and tile_n % 8 != 0:
        tile_n = max(8, tile_n - tile_n % 8)
    grid_n = pl.cdiv(n_rows, tile_n)

    kernel = functools.partial(
        _triplet_kernel,
        margin=None if margin is None else float(margin),
        n_rows=n_rows,
        tile_n=tile_n,
    )

    out_rows = 8 * grid_n
    cost = pl.CostEstimate(
        flops=6 * n_rows * d,
        transcendentals=4 * n_rows,
        bytes_accessed=3 * n_rows * d * itemsize + out_rows * 128 * 4,
    )

    # NOTE: for D < 128 each vreg carries D/128 useful lanes; accepted — the
    # kernel is HBM-bandwidth bound and compute hides under DMA anyway.
    partials = pl.pallas_call(
        kernel,
        out_shape=jax.ShapeDtypeStruct((out_rows, 128), jnp.float32),
        grid_spec=pltpu.PrefetchScalarGridSpec(
            num_scalar_prefetch=0,
            grid=(grid_n,),
            in_specs=[
                pl.BlockSpec((tile_n, d), lambda i: (i, 0)),
                pl.BlockSpec((tile_n, d), lambda i: (i, 0)),
                pl.BlockSpec((tile_n, d), lambda i: (i, 0)),
            ],
            out_specs=pl.BlockSpec((8, 128), lambda i: (i, 0)),
        ),
        compiler_params=pltpu.CompilerParams(
            dimension_semantics=("parallel",),
            vmem_limit_bytes=min((vmem_cap * 9) // 10, 128 * 1024 * 1024),
        ),
        cost_estimate=cost,
    )(anchor, pos, neg)

    # Partial sums live at [8*i, 0]; everything else is exactly zero, so a
    # plain sum over the tiny (8*grid_n, 128) array is exact.
    return jnp.sum(partials) / n_rows


def _reference(anchor, pos, neg, margin=None):
    """Pure-JAX reference (PyTorch semantics, same stable softplus form)."""
    if margin is None:
        ap = jnp.linalg.norm(anchor - pos, axis=1)
        an = jnp.linalg.norm(anchor - neg, axis=1)
        x = an - ap
        return jnp.mean(jnp.maximum(-x, 0.0) + jnp.log1p(jnp.exp(-jnp.abs(x))))
    eps = 1e-6
    ap = jnp.linalg.norm(anchor - pos + eps, axis=1)
    an = jnp.linalg.norm(anchor - neg + eps, axis=1)
    return jnp.mean(jnp.maximum(ap - an + margin, 0.0))


if __name__ == "__main__":
    key = jax.random.PRNGKey(0)
    k1, k2, k3, k4, k5, k6 = jax.random.split(key, 6)

    # --- small case (single full-extent block, D < 128) ----------------------
    N, D = 8, 32
    anchor = jax.random.normal(k1, (N, D), dtype=jnp.float32)
    pos = jax.random.normal(k2, (N, D), dtype=jnp.float32)
    neg = jax.random.normal(k3, (N, D), dtype=jnp.float32)

    loss_soft = triplet_loss(anchor, pos, neg, margin=None)
    jax.block_until_ready(loss_soft)
    assert jnp.allclose(loss_soft, _reference(anchor, pos, neg, None),
                        atol=1e-5, rtol=1e-4)

    loss_margin = triplet_loss(anchor, pos, neg, margin=1.0)
    jax.block_until_ready(loss_margin)
    assert jnp.allclose(loss_margin, _reference(anchor, pos, neg, 1.0),
                        atol=1e-5, rtol=1e-4)

    # --- multi-tile case with a ragged last tile (exercises masking path) ----
    N2, D2 = 100, 256
    a2 = jax.random.normal(k4, (N2, D2), dtype=jnp.float32)
    p2 = jax.random.normal(k5, (N2, D2), dtype=jnp.float32)
    n2 = jax.random.normal(k6, (N2, D2), dtype=jnp.float32)

    loss_soft2 = triplet_loss(a2, p2, n2, margin=None, tile_n=32)
    jax.block_until_ready(loss_soft2)
    assert jnp.allclose(loss_soft2, _reference(a2, p2, n2, None),
                        atol=1e-5, rtol=1e-4)

    loss_margin2 = triplet_loss(a2, p2, n2, margin=0.3, tile_n=32)
    jax.block_until_ready(loss_margin2)
    assert jnp.allclose(loss_margin2, _reference(a2, p2, n2, 0.3),
                        atol=1e-5, rtol=1e-4)

    # --- auto-tiling path (N >= 64 -> guaranteed >= 2 grid steps) ------------
    loss_auto = triplet_loss(a2, p2, n2, margin=None)
    jax.block_until_ready(loss_auto)
    assert jnp.allclose(loss_auto, _reference(a2, p2, n2, None),
                        atol=1e-5, rtol=1e-4)

    print("KERNEL_OK")
</pallas_src>

<mosaic_0001>
module attributes {stable_mosaic.version = 11 : i64} {
  func.func @_triplet_kernel(%arg0: i32, %arg1: memref<8x32xf32, #tpu.memory_space<vmem>>, %arg2: memref<8x32xf32, #tpu.memory_space<vmem>>, %arg3: memref<8x32xf32, #tpu.memory_space<vmem>>, %arg4: memref<8x128xf32, #tpu.memory_space<vmem>>) attributes {dimension_semantics = [#tpu.dimension_semantics<parallel>], iteration_bounds = array<i64: 1>, scalar_prefetch = 0 : i64, scratch_operands = 0 : i64, tpu.core_type = #tpu.core_type<tc>, window_params = [{transform_indices = @transform_0, window_bounds = array<i64: 8, 32>}, {transform_indices = @transform_1, window_bounds = array<i64: 8, 32>}, {transform_indices = @transform_2, window_bounds = array<i64: 8, 32>}, {transform_indices = @transform_3, window_bounds = array<i64: 8, 128>}]} {
    %c0 = arith.constant 0 : index
    %c0_0 = arith.constant 0 : index
    %0 = vector.load %arg1[%c0, %c0_0] : memref<8x32xf32, #tpu.memory_space<vmem>>, vector<8x32xf32>
    %c0_1 = arith.constant 0 : index
    %c0_2 = arith.constant 0 : index
    %1 = vector.load %arg2[%c0_1, %c0_2] : memref<8x32xf32, #tpu.memory_space<vmem>>, vector<8x32xf32>
    %c0_3 = arith.constant 0 : index
    %c0_4 = arith.constant 0 : index
    %2 = vector.load %arg3[%c0_3, %c0_4] : memref<8x32xf32, #tpu.memory_space<vmem>>, vector<8x32xf32>
    %3 = arith.subf %0, %1 : vector<8x32xf32>
    %4 = arith.subf %0, %2 : vector<8x32xf32>
    %5 = arith.mulf %3, %3 : vector<8x32xf32>
    %cst = arith.constant dense<0.000000e+00> : vector<8xf32>
    %6 = vector.multi_reduction <add>, %5, %cst [1] : vector<8x32xf32> to vector<8xf32>
    %7 = vector.shape_cast %6 : vector<8xf32> to vector<8x1xf32>
    %8 = math.sqrt %7 : vector<8x1xf32>
    %9 = arith.mulf %4, %4 : vector<8x32xf32>
    %cst_5 = arith.constant dense<0.000000e+00> : vector<8xf32>
    %10 = vector.multi_reduction <add>, %9, %cst_5 [1] : vector<8x32xf32> to vector<8xf32>
    %11 = vector.shape_cast %10 : vector<8xf32> to vector<8x1xf32>
    %12 = math.sqrt %11 : vector<8x1xf32>
    %13 = arith.subf %12, %8 : vector<8x1xf32>
    %cst_6 = arith.constant 0.000000e+00 : f32
    %14 = vector.broadcast %cst_6 : f32 to vector<8x1xf32>
    %15 = arith.subf %14, %13 : vector<8x1xf32>
    %cst_7 = arith.constant 0.000000e+00 : f32
    %16 = vector.broadcast %cst_7 : f32 to vector<8x1xf32>
    %17 = arith.maximumf %15, %16 : vector<8x1xf32>
    %18 = math.absf %13 : vector<8x1xf32>
    %cst_8 = arith.constant 0.000000e+00 : f32
    %19 = vector.broadcast %cst_8 : f32 to vector<8x1xf32>
    %20 = arith.subf %19, %18 : vector<8x1xf32>
    %21 = math.exp %20 : vector<8x1xf32>
    %22 = math.log1p %21 : vector<8x1xf32>
    %23 = arith.addf %17, %22 : vector<8x1xf32>
    %c8_i32 = arith.constant 8 : i32
    %24 = arith.muli %arg0, %c8_i32 : i32
    %25 = tpu.iota {dimensions = array<i32: 0>} : vector<8x1xi32>
    %26 = vector.broadcast %24 : i32 to vector<8x1xi32>
    %27 = arith.addi %26, %25 : vector<8x1xi32>
    %c8_i32_9 = arith.constant 8 : i32
    %28 = vector.broadcast %c8_i32_9 : i32 to vector<8x1xi32>
    %29 = arith.cmpi slt, %27, %28 : vector<8x1xi32>
    %cst_10 = arith.constant 0.000000e+00 : f32
    %30 = vector.broadcast %cst_10 : f32 to vector<8x1xf32>
    %31 = arith.select %29, %23, %30 : vector<8x1xi1>, vector<8x1xf32>
    %cst_11 = arith.constant dense<0.000000e+00> : vector<1xf32>
    %32 = vector.multi_reduction <add>, %31, %cst_11 [0] : vector<8x1xf32> to vector<1xf32>
    %33 = vector.shape_cast %32 : vector<1xf32> to vector<1x1xf32>
    %34 = tpu.iota {dimensions = array<i32: 0>} : vector<8x128xi32>
    %35 = tpu.iota {dimensions = array<i32: 1>} : vector<8x128xi32>
    %c0_i32 = arith.constant 0 : i32
    %36 = vector.broadcast %c0_i32 : i32 to vector<8x128xi32>
    %37 = arith.cmpi eq, %34, %36 : vector<8x128xi32>
    %c0_i32_12 = arith.constant 0 : i32
    %38 = vector.broadcast %c0_i32_12 : i32 to vector<8x128xi32>
    %39 = arith.cmpi eq, %35, %38 : vector<8x128xi32>
    %40 = arith.andi %37, %39 : vector<8x128xi1>
    %41 = vector.shape_cast %33 : vector<1x1xf32> to vector<1x1xf32>
    %42 = vector.broadcast %41 : vector<1x1xf32> to vector<8x128xf32>
    %cst_13 = arith.constant 0.000000e+00 : f32
    %43 = vector.broadcast %cst_13 : f32 to vector<8x128xf32>
    %44 = arith.select %40, %42, %43 : vector<8x128xi1>, vector<8x128xf32>
    %c0_14 = arith.constant 0 : index
    %c0_15 = arith.constant 0 : index
    %45 = vector.load %arg4[%c0_14, %c0_15] : memref<8x128xf32, #tpu.memory_space<vmem>>, vector<8x128xf32>
    tpu.vector_store %arg4[%c0_14, %c0_15], %44 {strides = array<i32>} : memref<8x128xf32, #tpu.memory_space<vmem>>, vector<8x128xf32>,
    return
  }
  func.func @transform_0(%arg0: i32) -> (i32, i32) {
    %c0_i32 = arith.constant 0 : i32
    %c0_i32_0 = arith.constant 0 : i32
    return %arg0, %c0_i32 : i32, i32
  }
  func.func @transform_1(%arg0: i32) -> (i32, i32) {
    %c0_i32 = arith.constant 0 : i32
    %c0_i32_0 = arith.constant 0 : i32
    return %arg0, %c0_i32 : i32, i32
  }
  func.func @transform_2(%arg0: i32) -> (i32, i32) {
    %c0_i32 = arith.constant 0 : i32
    %c0_i32_0 = arith.constant 0 : i32
    return %arg0, %c0_i32 : i32, i32
  }
  func.func @transform_3(%arg0: i32) -> (i32, i32) {
    %c0_i32 = arith.constant 0 : i32
    %c0_i32_0 = arith.constant 0 : i32
    return %arg0, %c0_i32 : i32, i32
  }
}

</mosaic_0001>

<bundles_post_ra>
// kernel: tpu_custom_call.1
= control target key start
LH: loop header
LB: loop body
LE: loop exit
PB: predicated region body
PF: predicated region fallthrough
CT: control target
= control target key end

     0   :  { %8 = vsyncpa [#allocation3], 0  ;;  %s265_s0 = inlined_call_operand.hbm [shape: f32[8,32], index: 0, kind: input, shape index: {}]   ;;  %s266_s1 = inlined_call_operand.hbm [shape: f32[8,32], index: 1, kind: input, shape index: {}]   ;;  %s267_s2 = inlined_call_operand.hbm [shape: f32[8,32], index: 2, kind: input, shape index: {}]   ;;  %s268_s3 = inlined_call_operand.hbm [shape: f32[8,128], index: 3, kind: output, shape index: {}]  }
   0x1   :  { %9 = vsyncpa [#allocation6], 0 }
   0x2   :  { %10 = vsyncpa [#allocation4], 0  ;;  %s229_s12 = smov [#allocation5]   ;;  %s230_s14 = smov [#allocation2]  }
   0x3   :  { %s27_s13 = sshll.u32 %s229_s12, 4  ;;  %s17_s15 = sshll.u32 %s230_s14, 4  ;;  %s28_s13 = int_to_ptr.vmem [resolvable:$true] %s27_s13  ;;  %s18_s15 = int_to_ptr.vmem [resolvable:$true] %s17_s15 }
   0x4   :  { %s151_s16 = scalar_lea.vmem %s28_s13, 128  ;;  %p156_p1 = scmp.lt.s32.totalorder %s28_s13, %s28_s13 }
   0x5   :  { %p152_p0 = scmp.ne.s32.totalorder %s28_s13, %s151_s16  ;;  %p157_p2 = scmp.lt.s32.totalorder %s151_s16, %s151_s16 }
   0x7   :  { %p158_p3 = por %p157_p2, %p156_p1 }
   0x9   :  { %p159_p4 = pnand %p158_p3, %p152_p0 }
   0xb   :  { %162 = shalt.err (!%p159_p4)
}
   0xc   :  { %30 = dma.hbm_to_vmem [thread:$0]  %s266_s1, 128, %s28_s13, [#allocation6]  }
   0xd   :  { %s171_s19 = scalar_lea.vmem %s18_s15, 128  ;;  %p176_p6 = scmp.lt.s32.totalorder %s18_s15, %s18_s15 }
   0xe   :  { %p172_p5 = scmp.ne.s32.totalorder %s18_s15, %s171_s19  ;;  %p177_p7 = scmp.lt.s32.totalorder %s171_s19, %s171_s19 }
  0x10   :  { %p178_p8 = por %p177_p7, %p176_p6 }
  0x12   :  { %p179_p9 = pnand %p178_p8, %p172_p5 }
  0x14   :  { %182 = shalt.err (!%p179_p9)
}
  0x15   :  { %20 = dma.hbm_to_vmem [thread:$0]  %s265_s0, 128, %s18_s15, [#allocation3]  }
  0x16   :  { %s231_s22 = smov [#allocation7]  }
  0x17   :  { %s37_s23 = sshll.u32 %s231_s22, 4  ;;  %s38_s23 = int_to_ptr.vmem [resolvable:$true] %s37_s23 }
  0x18   :  { %s191_s24 = scalar_lea.vmem %s38_s23, 128  ;;  %p196_p11 = scmp.lt.s32.totalorder %s38_s23, %s38_s23 }
  0x19   :  { %p192_p10 = scmp.ne.s32.totalorder %s38_s23, %s191_s24  ;;  %p197_p12 = scmp.lt.s32.totalorder %s191_s24, %s191_s24 }
  0x1b   :  { %p198_p13 = por %p197_p12, %p196_p11 }
  0x1d   :  { %p199_p0 = pnand %p198_p13, %p192_p10 }
  0x1f   :  { %202 = shalt.err (!%p199_p0)
}
  0x20   :  { %40 = dma.hbm_to_vmem [thread:$0]  %s267_s2, 128, %s38_s23, [#allocation6]  }
  0x21   :  { %223 = dma.done.wait [#allocation3], 128  }
  0x22   :  { %224 = vsyncadd [#allocation3], 4294967168 }
  0x23   :  { %225 = dma.done.wait [#allocation6], 256  }
  0x24   :  { %226 = vsyncadd [#allocation6], 4294967040  ;;  %v50_v0 = vld [vmem:[#allocation2] sm:$0xff]  ;;  %v51_v1 = vld [vmem:[#allocation5] sm:$0xff]  ;;  %vm56_vm0 = vcmask 261120   ;;  %v96_v37 = vlaneseq  ;;  %s232_s0 = smov [#allocation8]  }
  0x25   :  { %v52_v2 = vld [vmem:[#allocation7] sm:$0xff]  ;;  %v53_v3 = vsub.f32 %v50_v0, %v51_v1  ;;  %s121_s2 = sshll.u32 %s232_s0, 4  ;;  %s122_s2 = int_to_ptr.vmem [resolvable:$true] %s121_s2 }
  0x26   :  { %v54_v4 = vsub.f32 %v50_v0, %v52_v2  ;;  %v97_v39 = vshrl.u32 %v96_v37, 7  ;;  %v109_v41 = vand.u32 127, %v96_v37  ;;  %s203_s26 = scalar_lea.vmem %s122_s2, 128  ;;  %p208_p2 = scmp.lt.s32.totalorder %s122_s2, %s122_s2 }
  0x27   :  { %v55_v5 = vmul.f32 %v53_v3, %v53_v3  ;;  %p204_p1 = scmp.ne.s32.totalorder %s122_s2, %s203_s26  ;;  %p209_p3 = scmp.lt.s32.totalorder %s203_s26, %s203_s26 }
  0x28   :  { %v67_v6 = vmul.f32 %v54_v4, %v54_v4  ;;  %vm110_vm6 = vcmp.eq.s32.totalorder %v97_v39, 0  ;;  %vm111_vm7 = vcmp.eq.s32.totalorder %v109_v41, 0 }
  0x29   :  { %v57_v7 = vsel %vm56_vm0, %v55_v5, 0.0  ;;  %vm112_vm8 = vmand %vm110_vm6, %vm111_vm7  ;;  %p210_p4 = por %p209_p3, %p208_p2 }
  0x2a   :  { %58 = vadd.xlane.f32.xlu0 %v57_v7  ;;  %v68_v8 = vsel %vm56_vm0, %v67_v6, 0.0 }
  0x2b   :  { %p211_p5 = pnand %p210_p4, %p204_p1 }
  0x2e   :  { %69 = vadd.xlane.f32.xlu0 %v68_v8 }
  0xb3   :  { %v59_v9 = vpop.xlane.xlu0 %58 }
  0xb4   :  { %135 = vrsqrt.f32 %v59_v9  ;;  %vm62_vm1 = vcmp.eq.f32.partialorder %v59_v9, inf  ;;  %v65_v16 = vand.u32 2147483648, %v59_v9  ;;  %vm64_vm3 = vcmp.eq.f32.partialorder %v59_v9, 0.0 }
  0xb7   :  { %v70_v10 = vpop.xlane.xlu0 %69 }
  0xb8   :  { %137 = vrsqrt.f32 %v70_v10  ;;  %vm73_vm2 = vcmp.eq.f32.partialorder %v70_v10, inf  ;;  %v76_v17 = vand.u32 2147483648, %v70_v10  ;;  %vm75_vm4 = vcmp.eq.f32.partialorder %v70_v10, 0.0 }
  0xc1   :  { %v136_v11 = vpop.eup %135 }
  0xc2   :  { %v61_v12 = vmul.f32 %v136_v11, %v59_v9 }
  0xc4   :  { %v63_v14 = vsel %vm62_vm1, %v59_v9, %v61_v12 }
  0xc5   :  { %v138_v13 = vpop.eup %137  ;;  %v66_v19 = vsel %vm64_vm3, %v65_v16, %v63_v14 }
  0xc6   :  { %v72_v15 = vmul.f32 %v138_v13, %v70_v10 }
  0xc8   :  { %v74_v18 = vsel %vm73_vm2, %v70_v10, %v72_v15 }
  0xc9   :  { %v77_v20 = vsel %vm75_vm4, %v76_v17, %v74_v18 }
  0xca   :  { %v78_v21 = vsub.f32 %v77_v20, %v66_v19 }
  0xcc   :  { %v81_v22 = vand.u32 2147483647, %v78_v21  ;;  %v79_v29 = vsub.f32 0.0, %v78_v21 }
  0xce   :  { %v82_v23 = vsub.f32 0.0, %v81_v22  ;;  %v80_v34 = vmax.f32 %v79_v29, 0.0 }
  0xd0   :  { %v83_v24 = vmul.f32 1.442695, %v82_v23 }
  0xd2   :  { %139 = vpow2.f32 %v83_v24 }
  0xdf   :  { %v140_v25 = vpop.eup %139 }
  0xe0   :  { %v85_v26 = vadd.f32 1.0, %v140_v25  ;;  %v88_v27 = vmul.f32 -0.5, %v140_v25  ;;  %v91_v30 = vand.u32 2147483647, %v140_v25 }
  0xe2   :  { %141 = vlog2.f32 %v85_v26  ;;  %v89_v28 = vadd.f32 1.0, %v88_v27  ;;  %vm92_vm5 = vcmp.lt.f32.partialorder %v91_v30, 0.0004427343 }
  0xe4   :  { %v90_v33 = vmul.f32 %v140_v25, %v89_v28 }
  0xef   :  { %v142_v31 = vpop.eup %141 }
  0xf0   :  { %v87_v32 = vmul.f32 0.6931472, %v142_v31 }
  0xf2   :  { %v93_v35 = vsel %vm92_vm5, %v90_v33, %v87_v32 }
  0xf3   :  { %v94_v36 = vadd.f32 %v93_v35, %v80_v34 }
  0xf5   :  { %v102_v38 = vrot.slane %v94_v36, 4 }
  0xf7   :  { %v103_v40 = vadd.f32 %v102_v38, %v94_v36 }
  0xf9   :  { %v104_v42 = vrot.slane %v103_v40, 2 }
  0xfb   :  { %v105_v43 = vadd.f32 %v104_v42, %v103_v40 }
  0xfd   :  { %v106_v44 = vrot.slane %v105_v43, 1 }
  0xff   :  { %v107_v45 = vadd.f32 %v106_v44, %v105_v43 }
 0x101   :  { %v113_v46 = vsel %vm112_vm8, %v107_v45, 0.0 }
 0x102   :  { %114 = vst [vmem:[#allocation8] sm:$0xff] %v113_v46 }
 0x103   :  { %214 = shalt.err (!%p211_p5)
}
 0x104   :  { %124 = dma.vmem_to_hbm [thread:$0]  %s122_s2, 128, %s268_s3, [#allocation4]  }
 0x105   :  { %227 = dma.done.wait [#allocation4], 128  }
 0x106   :  { %228 = vsyncadd [#allocation4], 4294967168 }
 0x107   :  { %128 = vsyncpa [#allocation3], 1 }
 0x108   :  { %129 = vsyncpa [#allocation6], 1 }
 0x109   :  { %130 = vsyncpa [#allocation4], 1 }

</bundles_post_ra>
